<compile_context>
chip_gen: v7x
topology: tpu7x:2x2x1
jax: 0.10.0
libtpu: 0.0.40
codegen_flags: <defaults>
</compile_context>

<pallas_src>
import functools

import jax
import jax.numpy as jnp
from jax.experimental import pallas as pl
from jax.experimental.pallas import tpu as pltpu


def _round_up(x: int, m: int) -> int:
    return ((x + m - 1) // m) * m


def _largest_dividing_tile(n_pad: int, cap: int) -> int:
    """Largest multiple of 128 that divides n_pad and is <= cap (n_pad % 128 == 0)."""
    cap = max(128, min(cap, n_pad))
    for t in range(cap // 128, 0, -1):
        tile = t * 128
        if n_pad % tile == 0:
            return tile
    return 128


def _gcn_aggregate_kernel(a_ref, xw_ref, o_ref, *, tk, compute_dtype, xw_resident):
    # a_ref  : (tm, tk)          tile of A_hat, streamed in its HBM dtype
    # xw_ref : (n_k, Cp) resident | (tk, Cp) tiled  pre-linear features
    # o_ref  : (tm, Cp)  f32 output tile, resident across the k (reduction) axis
    k = pl.program_id(1)

    @pl.when(k == 0)
    def _init():
        o_ref[...] = jnp.zeros_like(o_ref)

    a = a_ref[...]
    if a.dtype != compute_dtype:
        a = a.astype(compute_dtype)          # in-VMEM cast, no extra HBM traffic

    if xw_resident:
        start = pl.multiple_of(k * tk, 128)
        xw = xw_ref[pl.ds(start, tk), :]
    else:
        xw = xw_ref[...]

    o_ref[...] += jnp.dot(a, xw, preferred_element_type=jnp.float32)


@functools.partial(jax.jit, static_argnames=("tm", "tk", "compute_dtype"))
def graph_convolution(x, a_hat, weight, *, tm=512, tk=2048,
                      compute_dtype=jnp.bfloat16):
    """out = A_hat @ (x @ weight.T); the aggregation runs in a Pallas TPU kernel."""
    n, c_in = x.shape
    c_out, c_in_w = weight.shape
    assert c_in_w == c_in
    assert a_hat.shape == (n, n)

    # ---- hoisted linear: tiny matmul, done once in plain XLA (f32) ----------
    xw = jnp.dot(x, weight.T, preferred_element_type=jnp.float32)   # (N, C_out)

    # ---- generation-aware budgets (trace-time queries) ----------------------
    vmem_cap = 128 << 20
    multi_tc = False
    try:
        vmem_cap = int(pltpu.get_tpu_info().vmem_capacity_bytes)
    except Exception:
        pass
    try:
        kind = jax.devices()[0].device_kind.lower().replace(" ", "")
        multi_tc = ("v7" in kind) or ("tpu7" in kind)
        if multi_tc:
            vmem_cap = min(vmem_cap, 64 << 20)
    except Exception:
        pass
    # Double-buffered working-set budget: ~1/3 of physical VMEM
    # (v5e/v6e ~42 MiB of 128, v7x ~21 MiB of 64).
    budget = max(8 << 20, vmem_cap // 3)

    a_item = jnp.dtype(a_hat.dtype).itemsize      # A streamed in native dtype
    c_item = jnp.dtype(compute_dtype).itemsize

    c_pad = _round_up(max(c_out, 1), 128)         # lane-dense output
    n_pad = _round_up(n, 128)                     # only (8,128)-aligned padding

    # ---- XW residency decision ----------------------------------------------
    xw_budget = budget // 3
    xw_resident = (2 * n_pad * c_pad * c_item) <= xw_budget

    # ---- tile sizing ---------------------------------------------------------
    tm_eff = _largest_dividing_tile(n_pad, tm)
    if multi_tc:
        # Only on 2-TC parts (v7x): ensure >= 2 row tiles so megacore sharding pays.
        while tm_eff > 128 and n_pad // tm_eff < 2:
            tm_eff = _largest_dividing_tile(n_pad, tm_eff // 2)

    def _fixed_bytes(tm_e):
        out_b = 2 * tm_e * c_pad * 4              # double-buffered f32 output tile
        if xw_resident:
            return out_b + 2 * n_pad * c_pad * c_item
        return out_b

    # Shrink tm if even a 128-wide K slice would blow the budget (edge case).
    while tm_eff > 128 and (_fixed_bytes(tm_eff) + 2 * tm_eff * 128 * a_item
                            + (0 if xw_resident else 2 * 128 * c_pad * c_item)) > budget:
        tm_eff = _largest_dividing_tile(n_pad, tm_eff // 2)

    fixed = _fixed_bytes(tm_eff)
    if xw_resident:
        tk_cap = max(128, (budget - fixed) // (2 * tm_eff * a_item))
    else:
        tk_cap = max(128, (budget - fixed) // (2 * tm_eff * a_item + 2 * c_pad * c_item))
    tk_eff = _largest_dividing_tile(n_pad, min(tk, tk_cap))

    # ---- pad operands (zero padding on the reduction axis is exact) ---------
    a_p = a_hat
    if n_pad != n:
        a_p = jnp.pad(a_hat, ((0, n_pad - n), (0, n_pad - n)))
    xw_p = xw
    if (n_pad != n) or (c_pad != c_out):
        xw_p = jnp.pad(xw, ((0, n_pad - n), (0, c_pad - c_out)))
    xw_p = xw_p.astype(compute_dtype)             # tiny array; cheap one-time cast

    grid = (n_pad // tm_eff, n_pad // tk_eff)     # reduction axis last

    if xw_resident:
        xw_spec = pl.BlockSpec((n_pad, c_pad), lambda i, k: (0, 0))  # DMA'd once
        xw_hbm_bytes = n_pad * c_pad * c_item
        work = (2 * tm_eff * tk_eff * a_item
                + 2 * n_pad * c_pad * c_item
                + 2 * tm_eff * c_pad * 4)
    else:
        xw_spec = pl.BlockSpec((tk_eff, c_pad), lambda i, k: (k, 0))
        xw_hbm_bytes = grid[0] * n_pad * c_pad * c_item
        work = (2 * tm_eff * tk_eff * a_item
                + 2 * tk_eff * c_pad * c_item
                + 2 * tm_eff * c_pad * 4)

    # VMEM limit derived from the actual working set (never below it), with
    # headroom for compiler scratch and capped below physical capacity.
    vmem_limit = max(work + (8 << 20), 16 << 20)
    vmem_limit = min(vmem_limit, vmem_cap - (8 << 20))
    vmem_limit = int(max(vmem_limit, work + (2 << 20)))

    cost = pl.CostEstimate(
        flops=2 * n_pad * n_pad * c_pad,
        transcendentals=0,
        bytes_accessed=int(n_pad * n_pad * a_item + xw_hbm_bytes + n_pad * c_pad * 4),
    )

    kernel = functools.partial(_gcn_aggregate_kernel, tk=tk_eff,
                               compute_dtype=compute_dtype,
                               xw_resident=xw_resident)

    out_padded = pl.pallas_call(
        kernel,
        out_shape=jax.ShapeDtypeStruct((n_pad, c_pad), jnp.float32),
        grid_spec=pltpu.PrefetchScalarGridSpec(
            num_scalar_prefetch=0,
            grid=grid,
            in_specs=[
                pl.BlockSpec((tm_eff, tk_eff), lambda i, k: (i, k)),  # A tile
                xw_spec,                                              # XW (resident/tiled)
            ],
            out_specs=pl.BlockSpec((tm_eff, c_pad), lambda i, k: (i, 0)),
        ),
        compiler_params=pltpu.CompilerParams(
            dimension_semantics=("parallel", "arbitrary"),
            vmem_limit_bytes=vmem_limit),
        cost_estimate=cost,
    )(a_p, xw_p)

    if n_pad == n and c_pad == c_out:
        return out_padded
    return out_padded[:n, :c_out]


def graph_convolution_ref(x, a_hat, weight):
    return a_hat @ (x @ weight.T)


if __name__ == "__main__":
    key = jax.random.PRNGKey(0)
    k_x, k_a, k_w = jax.random.split(key, 3)

    n_nodes, c_in, c_out = 256, 32, 16

    # Node features.
    x = jax.random.normal(k_x, (n_nodes, c_in), dtype=jnp.float32)

    # Symmetric, normalized adjacency A_hat = D^-1/2 (A+I) D^-1/2 (dense).
    logits = jax.random.uniform(k_a, (n_nodes, n_nodes))
    adj = (logits + logits.T > 1.4).astype(jnp.float32)
    adj = adj + jnp.eye(n_nodes, dtype=jnp.float32)
    deg = adj.sum(axis=1)
    d_inv_sqrt = 1.0 / jnp.sqrt(deg)
    a_hat = adj * d_inv_sqrt[:, None] * d_inv_sqrt[None, :]

    # nn.Linear(in, out, bias=False) default init: U(-1/sqrt(in), 1/sqrt(in)).
    bound = 1.0 / jnp.sqrt(jnp.float32(c_in))
    weight = jax.random.uniform(k_w, (c_out, c_in), dtype=jnp.float32,
                                minval=-bound, maxval=bound)

    ref = graph_convolution_ref(x, a_hat, weight)

    # Exact structural check in f32 (A never cast; kernel dot in f32).
    out_f32 = jax.block_until_ready(
        graph_convolution(x, a_hat, weight, compute_dtype=jnp.float32))
    assert out_f32.shape == (n_nodes, c_out)
    assert jnp.allclose(out_f32, ref, atol=1e-4, rtol=1e-4), "f32 mismatch vs reference"

    # Default bf16 MXU path (A cast per-tile inside the kernel, f32 accumulation).
    # NOTE: bf16 A drops mantissa bits of the degree-normalized weights; error
    # grows ~sqrt(N) for very large/high-degree graphs — keep the f32 path then.
    out_bf16 = jax.block_until_ready(graph_convolution(x, a_hat, weight))
    assert out_bf16.shape == (n_nodes, c_out)
    assert jnp.allclose(out_bf16, ref, atol=2e-2, rtol=2e-2), "bf16 mismatch vs reference"

    print("KERNEL_OK")
</pallas_src>

<mosaic_0001>
module attributes {stable_mosaic.version = 11 : i64} {
  func.func @_gcn_aggregate_kernel(%arg0: i32, %arg1: i32, %arg2: memref<256x256xf32, #tpu.memory_space<vmem>>, %arg3: memref<256x128xf32, #tpu.memory_space<vmem>>, %arg4: memref<256x128xf32, #tpu.memory_space<vmem>>) attributes {dimension_semantics = [#tpu.dimension_semantics<parallel>, #tpu.dimension_semantics<arbitrary>], iteration_bounds = array<i64: 1, 1>, scalar_prefetch = 0 : i64, scratch_operands = 0 : i64, tpu.core_type = #tpu.core_type<tc>, window_params = [{transform_indices = @transform_0, window_bounds = array<i64: 256, 256>}, {pipeline_mode = #tpu.pipeline_mode<synchronous>, transform_indices = @transform_1, window_bounds = array<i64: 256, 128>}, {transform_indices = @transform_2, window_bounds = array<i64: 256, 128>}]} {
    %c0_i32 = arith.constant 0 : i32
    %0 = arith.cmpi eq, %arg1, %c0_i32 : i32
    %1 = arith.extui %0 : i1 to i32
    %c0_i32_0 = arith.constant 0 : i32
    %2 = arith.cmpi ne, %1, %c0_i32_0 : i32
    scf.if %2 {
      %cst_7 = arith.constant 0.000000e+00 : f32
      %12 = vector.broadcast %cst_7 : f32 to vector<256x128xf32>
      %c0_8 = arith.constant 0 : index
      %c0_9 = arith.constant 0 : index
      %13 = vector.load %arg4[%c0_8, %c0_9] : memref<256x128xf32, #tpu.memory_space<vmem>>, vector<256x128xf32>
      tpu.vector_store %arg4[%c0_8, %c0_9], %12 {strides = array<i32>} : memref<256x128xf32, #tpu.memory_space<vmem>>, vector<256x128xf32>,
    } else {
    }
    %c0 = arith.constant 0 : index
    %c0_1 = arith.constant 0 : index
    %3 = vector.load %arg2[%c0, %c0_1] : memref<256x256xf32, #tpu.memory_space<vmem>>, vector<256x256xf32>
    %c256_i32 = arith.constant 256 : i32
    %4 = arith.muli %arg1, %c256_i32 : i32
    %5 = tpu.assume_multiple %4, 128 : i32
    %6 = arith.index_cast %5 : i32 to index
    %c0_2 = arith.constant 0 : index
    %7 = vector.load %arg3[%6, %c0_2] : memref<256x128xf32, #tpu.memory_space<vmem>>, vector<256x128xf32>
    %c0_3 = arith.constant 0 : index
    %c0_4 = arith.constant 0 : index
    %8 = vector.load %arg4[%c0_3, %c0_4] : memref<256x128xf32, #tpu.memory_space<vmem>>, vector<256x128xf32>
    %cst = arith.constant dense<0.000000e+00> : vector<256x128xf32>
    %9 = tpu.matmul %3, %7, %cst {dimension_numbers = #tpu.dot_dimension_numbers<[1], [0], [0], [1], [0, 0, 1, 1], [], []>} : vector<256x256xf32>, vector<256x128xf32>, vector<256x128xf32> -> vector<256x128xf32>
    %10 = arith.addf %8, %9 : vector<256x128xf32>
    %c0_5 = arith.constant 0 : index
    %c0_6 = arith.constant 0 : index
    %11 = vector.load %arg4[%c0_5, %c0_6] : memref<256x128xf32, #tpu.memory_space<vmem>>, vector<256x128xf32>
    tpu.vector_store %arg4[%c0_5, %c0_6], %10 {strides = array<i32>} : memref<256x128xf32, #tpu.memory_space<vmem>>, vector<256x128xf32>,
    return
  }
  func.func @transform_0(%arg0: i32, %arg1: i32) -> (i32, i32) {
    %c0_i32 = arith.constant 0 : i32
    return %arg0, %arg1 : i32, i32
  }
  func.func @transform_1(%arg0: i32, %arg1: i32) -> (i32, i32) {
    %c0_i32 = arith.constant 0 : i32
    %c0_i32_0 = arith.constant 0 : i32
    %c0_i32_1 = arith.constant 0 : i32
    return %c0_i32, %c0_i32_0 : i32, i32
  }
  func.func @transform_2(%arg0: i32, %arg1: i32) -> (i32, i32) {
    %c0_i32 = arith.constant 0 : i32
    %c0_i32_0 = arith.constant 0 : i32
    return %arg0, %c0_i32 : i32, i32
  }
}

</mosaic_0001>

<bundles_post_ra>
// kernel: graph_convolution.1
= control target key start
LH: loop header
LB: loop body
LE: loop exit
PB: predicated region body
PF: predicated region fallthrough
CT: control target
= control target key end

     0   :  { %v552_v0 = vmov 0.0|0.0   ;;  %s984_s1 = inlined_call_operand.vmem [shape: f32[256,128], index: 1, kind: input, shape index: {}]   ;;  %s985_s0 = inlined_call_operand.vmem [shape: f32[256,256], index: 0, kind: input, shape index: {}]   ;;  %s986_s2 = inlined_call_operand.vmem [shape: f32[256,128], index: 2, kind: output, shape index: {}]  }
   0x1   :  { %470 = vmatprep.subr.bf16.mxu0 %v552_v0  ;;  %518 = vmatprep.subr.bf16.mxu1 %v552_v0  ;;  %v113_v1 = vld [vmem:[%s984_s1] sm:$0xff]  ;;  %v114_v2 = vld [vmem:[%s984_s1 + $0x8] sm:$0xff]  ;;  %v115_v3 = vld [vmem:[%s984_s1 + $0x10] sm:$0xff] }
   0x2   :  { %v471_v4 = vpack.c.bf16 %v114_v2, %v113_v1  ;;  %v116_v5 = vld [vmem:[%s984_s1 + $0x18] sm:$0xff]  ;;  %v117_v7 = vld [vmem:[%s984_s1 + $0x20] sm:$0xff]  ;;  %v118_v8 = vld [vmem:[%s984_s1 + $0x28] sm:$0xff] }
   0x3   :  { %v474_v6 = vpack.c.bf16 %v116_v5, %v115_v3  ;;  %v477_v9 = vpack.c.bf16 %v118_v8, %v117_v7  ;;  %v119_v10 = vld [vmem:[%s984_s1 + $0x30] sm:$0xff]  ;;  %v120_v11 = vld [vmem:[%s984_s1 + $0x38] sm:$0xff]  ;;  %v48_v12 = vld [vmem:[%s985_s0 + $0x8] sm:$0xff] }
   0x4   :  { %472 = vmatpush1.bf16.msra.mxu0 %v471_v4  ;;  %534 = vmatpush1.bf16.msra.mxu1 %v471_v4  ;;  %v480_v13 = vpack.c.bf16 %v120_v11, %v119_v10  ;;  %v80_v14 = vld [vmem:[%s985_s0 + $0x108] sm:$0xff]  ;;  %v121_v15 = vld [vmem:[%s984_s1 + $0x40] sm:$0xff]  ;;  %v123_v18 = vld [vmem:[%s984_s1 + $0x50] sm:$0xff] }
   0x5   :  { %473 = vmatprep.subr.bf16.mxu0 %v552_v0  ;;  %519 = vmatprep.subr.bf16.mxu1 %v552_v0  ;;  %v122_v16 = vld [vmem:[%s984_s1 + $0x48] sm:$0xff]  ;;  %v124_v19 = vld [vmem:[%s984_s1 + $0x58] sm:$0xff]  ;;  %v125_v21 = vld [vmem:[%s984_s1 + $0x60] sm:$0xff] }
   0x6   :  { %241 = vmatprep.mubr.f32.mxu0 %v48_v12  ;;  %321 = vmatprep.mubr.f32.mxu1 %v80_v14  ;;  %v483_v17 = vpack.c.bf16 %v122_v16, %v121_v15  ;;  %v486_v20 = vpack.c.bf16 %v124_v19, %v123_v18  ;;  %v126_v22 = vld [vmem:[%s984_s1 + $0x68] sm:$0xff]  ;;  %v127_v24 = vld [vmem:[%s984_s1 + $0x70] sm:$0xff]  ;;  %v128_v25 = vld [vmem:[%s984_s1 + $0x78] sm:$0xff] }
   0x7   :  { %v489_v23 = vpack.c.bf16 %v126_v22, %v125_v21  ;;  %v492_v26 = vpack.c.bf16 %v128_v25, %v127_v24  ;;  %v129_v27 = vld [vmem:[%s984_s1 + $0x80] sm:$0xff]  ;;  %v130_v28 = vld [vmem:[%s984_s1 + $0x88] sm:$0xff]  ;;  %v131_v30 = vld [vmem:[%s984_s1 + $0x90] sm:$0xff] }
   0x8   :  { %475 = vmatpush1.bf16.msra.mxu0 %v474_v6  ;;  %535 = vmatpush1.bf16.msra.mxu1 %v474_v6  ;;  %v495_v29 = vpack.c.bf16 %v130_v28, %v129_v27  ;;  %v132_v31 = vld [vmem:[%s984_s1 + $0x98] sm:$0xff]  ;;  %v133_v33 = vld [vmem:[%s984_s1 + $0xa0] sm:$0xff]  ;;  %v134_v34 = vld [vmem:[%s984_s1 + $0xa8] sm:$0xff] }
   0x9   :  { %476 = vmatprep.subr.bf16.mxu0 %v552_v0  ;;  %520 = vmatprep.subr.bf16.mxu1 %v552_v0  ;;  %v498_v32 = vpack.c.bf16 %v132_v31, %v131_v30  ;;  %v501_v35 = vpack.c.bf16 %v134_v34, %v133_v33  ;;  %v135_v36 = vld [vmem:[%s984_s1 + $0xb0] sm:$0xff]  ;;  %v136_v37 = vld [vmem:[%s984_s1 + $0xb8] sm:$0xff]  ;;  %v137_v39 = vld [vmem:[%s984_s1 + $0xc0] sm:$0xff] }
   0xa   :  { %v504_v38 = vpack.c.bf16 %v136_v37, %v135_v36  ;;  %v138_v40 = vld [vmem:[%s984_s1 + $0xc8] sm:$0xff]  ;;  %v139_v42 = vld [vmem:[%s984_s1 + $0xd0] sm:$0xff]  ;;  %v140_v43 = vld [vmem:[%s984_s1 + $0xd8] sm:$0xff] }
   0xb   :  { %v507_v41 = vpack.c.bf16 %v138_v40, %v137_v39  ;;  %v510_v44 = vpack.c.bf16 %v140_v43, %v139_v42  ;;  %v141_v45 = vld [vmem:[%s984_s1 + $0xe0] sm:$0xff]  ;;  %v142_v46 = vld [vmem:[%s984_s1 + $0xe8] sm:$0xff]  ;;  %v143_v48 = vld [vmem:[%s984_s1 + $0xf0] sm:$0xff] }
   0xc   :  { %478 = vmatpush1.bf16.msra.mxu0 %v477_v9  ;;  %536 = vmatpush1.bf16.msra.mxu1 %v477_v9  ;;  %v513_v47 = vpack.c.bf16 %v142_v46, %v141_v45  ;;  %v144_v49 = vld [vmem:[%s984_s1 + $0xf8] sm:$0xff]  ;;  %v47_v51 = vld [vmem:[%s985_s0] sm:$0xff]  ;;  %v49_v55 = vld [vmem:[%s985_s0 + $0x10] sm:$0xff] }
   0xd   :  { %479 = vmatprep.subr.bf16.mxu0 %v552_v0  ;;  %521 = vmatprep.subr.bf16.mxu1 %v552_v0  ;;  %v516_v50 = vpack.c.bf16 %v144_v49, %v143_v48  ;;  %v79_v52 = vld [vmem:[%s985_s0 + $0x100] sm:$0xff]  ;;  %v50_v53 = vld [vmem:[%s985_s0 + $0x18] sm:$0xff]  ;;  %v81_v56 = vld [vmem:[%s985_s0 + $0x110] sm:$0xff] }
   0xe   :  { %v82_v54 = vld [vmem:[%s985_s0 + $0x118] sm:$0xff]  ;;  %v52_v57 = vld [vmem:[%s985_s0 + $0x28] sm:$0xff]  ;;  %v51_v59 = vld [vmem:[%s985_s0 + $0x20] sm:$0xff] }
   0xf   :  { %v84_v58 = vld [vmem:[%s985_s0 + $0x128] sm:$0xff]  ;;  %v83_v60 = vld [vmem:[%s985_s0 + $0x120] sm:$0xff]  ;;  %v54_v61 = vld [vmem:[%s985_s0 + $0x38] sm:$0xff] }
  0x10   :  { %481 = vmatpush1.bf16.msra.mxu0 %v480_v13  ;;  %537 = vmatpush1.bf16.msra.mxu1 %v480_v13  ;;  %v86_v62 = vld [vmem:[%s985_s0 + $0x138] sm:$0xff]  ;;  %v53_v63 = vld [vmem:[%s985_s0 + $0x30] sm:$0xff]  ;;  %v56_v1 = vld [vmem:[%s985_s0 + $0x48] sm:$0xff] }
  0x11   :  { %482 = vmatprep.subr.bf16.mxu0 %v552_v0  ;;  %522 = vmatprep.subr.bf16.mxu1 %v552_v0  ;;  %v88_v2 = vld [vmem:[%s985_s0 + $0x148] sm:$0xff]  ;;  %v55_v3 = vld [vmem:[%s985_s0 + $0x40] sm:$0xff]  ;;  %v58_v5 = vld [vmem:[%s985_s0 + $0x58] sm:$0xff] }
  0x12   :  { %v87_v4 = vld [vmem:[%s985_s0 + $0x140] sm:$0xff]  ;;  %v90_v6 = vld [vmem:[%s985_s0 + $0x158] sm:$0xff]  ;;  %v57_v7 = vld [vmem:[%s985_s0 + $0x50] sm:$0xff] }
  0x13   :  { %v89_v8 = vld [vmem:[%s985_s0 + $0x150] sm:$0xff]  ;;  %v60_v9 = vld [vmem:[%s985_s0 + $0x68] sm:$0xff]  ;;  %v59_v11 = vld [vmem:[%s985_s0 + $0x60] sm:$0xff] }
  0x14   :  { %484 = vmatpush1.bf16.msra.mxu0 %v483_v17  ;;  %538 = vmatpush1.bf16.msra.mxu1 %v483_v17  ;;  %v92_v10 = vld [vmem:[%s985_s0 + $0x168] sm:$0xff]  ;;  %v91_v12 = vld [vmem:[%s985_s0 + $0x160] sm:$0xff]  ;;  %v62_v13 = vld [vmem:[%s985_s0 + $0x78] sm:$0xff] }
  0x15   :  { %485 = vmatprep.subr.bf16.mxu0 %v552_v0  ;;  %523 = vmatprep.subr.bf16.mxu1 %v552_v0  ;;  %v94_v14 = vld [vmem:[%s985_s0 + $0x178] sm:$0xff]  ;;  %v61_v15 = vld [vmem:[%s985_s0 + $0x70] sm:$0xff]  ;;  %v64_v17 = vld [vmem:[%s985_s0 + $0x88] sm:$0xff] }
  0x16   :  { %v93_v16 = vld [vmem:[%s985_s0 + $0x170] sm:$0xff]  ;;  %v96_v18 = vld [vmem:[%s985_s0 + $0x188] sm:$0xff]  ;;  %v63_v19 = vld [vmem:[%s985_s0 + $0x80] sm:$0xff] }
  0x17   :  { %v66_v21 = vld [vmem:[%s985_s0 + $0x98] sm:$0xff]  ;;  %v97_v24 = vld [vmem:[%s985_s0 + $0x190] sm:$0xff]  ;;  %v68_v25 = vld [vmem:[%s985_s0 + $0xa8] sm:$0xff] }
  0x18   :  { %487 = vmatpush1.bf16.msra.mxu0 %v486_v20  ;;  %539 = vmatpush1.bf16.msra.mxu1 %v486_v20  ;;  %v95_v20 = vld [vmem:[%s985_s0 + $0x180] sm:$0xff]  ;;  %v98_v22 = vld [vmem:[%s985_s0 + $0x198] sm:$0xff]  ;;  %v69_v31 = vld [vmem:[%s985_s0 + $0xb0] sm:$0xff] }
  0x19   :  { %488 = vmatprep.subr.bf16.mxu0 %v552_v0  ;;  %524 = vmatprep.subr.bf16.mxu1 %v552_v0  ;;  %v67_v27 = vld [vmem:[%s985_s0 + $0xa0] sm:$0xff]  ;;  %v102_v30 = vld [vmem:[%s985_s0 + $0x1b8] sm:$0xff]  ;;  %v72_v33 = vld [vmem:[%s985_s0 + $0xc8] sm:$0xff] }
  0x1a   :  { %v99_v28 = vld [vmem:[%s985_s0 + $0x1a0] sm:$0xff]  ;;  %v104_v34 = vld [vmem:[%s985_s0 + $0x1c8] sm:$0xff]  ;;  %v74_v37 = vld [vmem:[%s985_s0 + $0xd8] sm:$0xff] }
  0x1b   :  { %v103_v36 = vld [vmem:[%s985_s0 + $0x1c0] sm:$0xff]  ;;  %v73_v39 = vld [vmem:[%s985_s0 + $0xd0] sm:$0xff]  ;;  %v108_v42 = vld [vmem:[%s985_s0 + $0x1e8] sm:$0xff] }
  0x1c   :  { %490 = vmatpush1.bf16.msra.mxu0 %v489_v23  ;;  %540 = vmatpush1.bf16.msra.mxu1 %v489_v23  ;;  %v65_v23 = vld [vmem:[%s985_s0 + $0x90] sm:$0xff]  ;;  %v75_v43 = vld [vmem:[%s985_s0 + $0xe0] sm:$0xff]  ;;  %v78_v45 = vld [vmem:[%s985_s0 + $0xf8] sm:$0xff] }
  0x1d   :  { %491 = vmatprep.subr.bf16.mxu0 %v552_v0  ;;  %525 = vmatprep.subr.bf16.mxu1 %v552_v0  ;;  %v105_v40 = vld [vmem:[%s985_s0 + $0x1d0] sm:$0xff]  ;;  %v110_v46 = vld [vmem:[%s985_s0 + $0x1f8] sm:$0xff] }
  0x1e   :  { %v109_v48 = vld [vmem:[%s985_s0 + $0x1f0] sm:$0xff] }
  0x20   :  { %493 = vmatpush1.bf16.msra.mxu0 %v492_v26  ;;  %541 = vmatpush1.bf16.msra.mxu1 %v492_v26  ;;  %v100_v26 = vld [vmem:[%s985_s0 + $0x1a8] sm:$0xff] }
  0x21   :  { %494 = vmatprep.subr.bf16.mxu0 %v552_v0  ;;  %526 = vmatprep.subr.bf16.mxu1 %v552_v0 }
  0x24   :  { %496 = vmatpush1.bf16.msra.mxu0 %v495_v29  ;;  %542 = vmatpush1.bf16.msra.mxu1 %v495_v29  ;;  %v70_v29 = vld [vmem:[%s985_s0 + $0xb8] sm:$0xff] }
  0x25   :  { %497 = vmatprep.subr.bf16.mxu0 %v552_v0  ;;  %527 = vmatprep.subr.bf16.mxu1 %v552_v0 }
  0x28   :  { %499 = vmatpush1.bf16.msra.mxu0 %v498_v32  ;;  %543 = vmatpush1.bf16.msra.mxu1 %v498_v32  ;;  %v101_v32 = vld [vmem:[%s985_s0 + $0x1b0] sm:$0xff] }
  0x29   :  { %500 = vmatprep.subr.bf16.mxu0 %v552_v0  ;;  %528 = vmatprep.subr.bf16.mxu1 %v552_v0 }
  0x2c   :  { %502 = vmatpush1.bf16.msra.mxu0 %v501_v35  ;;  %544 = vmatpush1.bf16.msra.mxu1 %v501_v35  ;;  %v71_v35 = vld [vmem:[%s985_s0 + $0xc0] sm:$0xff] }
  0x2d   :  { %503 = vmatprep.subr.bf16.mxu0 %v552_v0  ;;  %529 = vmatprep.subr.bf16.mxu1 %v552_v0 }
  0x30   :  { %505 = vmatpush1.bf16.msra.mxu0 %v504_v38  ;;  %545 = vmatpush1.bf16.msra.mxu1 %v504_v38  ;;  %v106_v38 = vld [vmem:[%s985_s0 + $0x1d8] sm:$0xff] }
  0x31   :  { %506 = vmatprep.subr.bf16.mxu0 %v552_v0  ;;  %530 = vmatprep.subr.bf16.mxu1 %v552_v0 }
  0x34   :  { %508 = vmatpush1.bf16.msra.mxu0 %v507_v41  ;;  %546 = vmatpush1.bf16.msra.mxu1 %v507_v41  ;;  %v76_v41 = vld [vmem:[%s985_s0 + $0xe8] sm:$0xff] }
  0x35   :  { %509 = vmatprep.subr.bf16.mxu0 %v552_v0  ;;  %531 = vmatprep.subr.bf16.mxu1 %v552_v0 }
  0x38   :  { %511 = vmatpush1.bf16.msra.mxu0 %v510_v44  ;;  %547 = vmatpush1.bf16.msra.mxu1 %v510_v44  ;;  %v107_v44 = vld [vmem:[%s985_s0 + $0x1e0] sm:$0xff] }
  0x39   :  { %512 = vmatprep.subr.bf16.mxu0 %v552_v0  ;;  %532 = vmatprep.subr.bf16.mxu1 %v552_v0 }
  0x3c   :  { %514 = vmatpush1.bf16.msra.mxu0 %v513_v47  ;;  %548 = vmatpush1.bf16.msra.mxu1 %v513_v47  ;;  %v77_v47 = vld [vmem:[%s985_s0 + $0xf0] sm:$0xff] }
  0x3d   :  { %515 = vmatprep.subr.bf16.mxu0 %v552_v0  ;;  %533 = vmatprep.subr.bf16.mxu1 %v552_v0  ;;  %v85_v0 = vld [vmem:[%s985_s0 + $0x130] sm:$0xff] }
  0x40   :  { %517 = vmatpush1.bf16.msra.mxu0 %v516_v50  ;;  %549 = vmatpush1.bf16.msra.mxu1 %v516_v50 }
  0x43   :  { %242 = vmatmul.mubr.f32.vlgmr.msra.gmra.mrb[0].mxu0 %v47_v51  ;;  %322 = vmatmul.mubr.f32.vlgmr.msra.gmra.mrb[0].mxu1 %v79_v52 }
  0x44   :  { %246 = vmatprep.mubr.f32.mxu0 %v50_v53  ;;  %326 = vmatprep.mubr.f32.mxu1 %v82_v54 }
  0x47   :  { %247 = vmatmul.mubr.f32.gmra.mrb[2].mxu0 %v49_v55  ;;  %327 = vmatmul.mubr.f32.gmra.mrb[2].mxu1 %v81_v56 }
  0x48   :  { %251 = vmatprep.mubr.f32.mxu0 %v52_v57  ;;  %331 = vmatprep.mubr.f32.mxu1 %v84_v58 }
  0x4b   :  { %252 = vmatmul.mubr.f32.gmra.mrb[4].mxu0 %v51_v59  ;;  %332 = vmatmul.mubr.f32.gmra.mrb[4].mxu1 %v83_v60 }
  0x4c   :  { %256 = vmatprep.mubr.f32.mxu0 %v54_v61  ;;  %336 = vmatprep.mubr.f32.mxu1 %v86_v62 }
  0x4f   :  { %257 = vmatmul.mubr.f32.gmra.mrb[6].mxu0 %v53_v63  ;;  %337 = vmatmul.mubr.f32.gmra.mrb[6].mxu1 %v85_v0 }
  0x50   :  { %261 = vmatprep.mubr.f32.mxu0 %v56_v1  ;;  %341 = vmatprep.mubr.f32.mxu1 %v88_v2 }
  0x53   :  { %262 = vmatmul.mubr.f32.gmra.mrb[8].mxu0 %v55_v3  ;;  %342 = vmatmul.mubr.f32.gmra.mrb[8].mxu1 %v87_v4 }
  0x54   :  { %266 = vmatprep.mubr.f32.mxu0 %v58_v5  ;;  %346 = vmatprep.mubr.f32.mxu1 %v90_v6 }
  0x57   :  { %267 = vmatmul.mubr.f32.gmra.mrb[10].mxu0 %v57_v7  ;;  %347 = vmatmul.mubr.f32.gmra.mrb[10].mxu1 %v89_v8 }
  0x58   :  { %271 = vmatprep.mubr.f32.mxu0 %v60_v9  ;;  %351 = vmatprep.mubr.f32.mxu1 %v92_v10 }
  0x5b   :  { %272 = vmatmul.mubr.f32.gmra.mrb[12].mxu0 %v59_v11  ;;  %352 = vmatmul.mubr.f32.gmra.mrb[12].mxu1 %v91_v12 }
  0x5c   :  { %276 = vmatprep.mubr.f32.mxu0 %v62_v13  ;;  %356 = vmatprep.mubr.f32.mxu1 %v94_v14 }
  0x5f   :  { %277 = vmatmul.mubr.f32.gmra.mrb[14].mxu0 %v61_v15  ;;  %357 = vmatmul.mubr.f32.gmra.mrb[14].mxu1 %v93_v16 }
  0x60   :  { %281 = vmatprep.mubr.f32.mxu0 %v64_v17  ;;  %361 = vmatprep.mubr.f32.mxu1 %v96_v18 }
  0x63   :  { %282 = vmatmul.mubr.f32.gmra.mrb[16].mxu0 %v63_v19  ;;  %362 = vmatmul.mubr.f32.gmra.mrb[16].mxu1 %v95_v20 }
  0x64   :  { %286 = vmatprep.mubr.f32.mxu0 %v66_v21  ;;  %366 = vmatprep.mubr.f32.mxu1 %v98_v22 }
  0x67   :  { %287 = vmatmul.mubr.f32.gmra.mrb[18].mxu0 %v65_v23  ;;  %367 = vmatmul.mubr.f32.gmra.mrb[18].mxu1 %v97_v24 }
  0x68   :  { %291 = vmatprep.mubr.f32.mxu0 %v68_v25  ;;  %371 = vmatprep.mubr.f32.mxu1 %v100_v26 }
  0x6b   :  { %292 = vmatmul.mubr.f32.gmra.mrb[20].mxu0 %v67_v27  ;;  %372 = vmatmul.mubr.f32.gmra.mrb[20].mxu1 %v99_v28 }
  0x6c   :  { %296 = vmatprep.mubr.f32.mxu0 %v70_v29  ;;  %376 = vmatprep.mubr.f32.mxu1 %v102_v30 }
  0x6f   :  { %297 = vmatmul.mubr.f32.gmra.mrb[22].mxu0 %v69_v31  ;;  %377 = vmatmul.mubr.f32.gmra.mrb[22].mxu1 %v101_v32 }
  0x70   :  { %301 = vmatprep.mubr.f32.mxu0 %v72_v33  ;;  %381 = vmatprep.mubr.f32.mxu1 %v104_v34 }
  0x73   :  { %302 = vmatmul.mubr.f32.gmra.mrb[24].mxu0 %v71_v35  ;;  %382 = vmatmul.mubr.f32.gmra.mrb[24].mxu1 %v103_v36 }
  0x74   :  { %306 = vmatprep.mubr.f32.mxu0 %v74_v37  ;;  %386 = vmatprep.mubr.f32.mxu1 %v106_v38 }
  0x77   :  { %307 = vmatmul.mubr.f32.gmra.mrb[26].mxu0 %v73_v39  ;;  %387 = vmatmul.mubr.f32.gmra.mrb[26].mxu1 %v105_v40 }
  0x78   :  { %311 = vmatprep.mubr.f32.mxu0 %v76_v41  ;;  %391 = vmatprep.mubr.f32.mxu1 %v108_v42 }
  0x7b   :  { %312 = vmatmul.mubr.f32.gmra.mrb[28].mxu0 %v75_v43  ;;  %392 = vmatmul.mubr.f32.gmra.mrb[28].mxu1 %v107_v44 }
  0x7c   :  { %316 = vmatprep.mubr.f32.mxu0 %v78_v45  ;;  %396 = vmatprep.mubr.f32.mxu1 %v110_v46 }
  0x7f   :  { %317 = vmatmul.mubr.f32.gmra.mrb[30].mxu0 %v77_v47  ;;  %397 = vmatmul.mubr.f32.gmra.mrb[30].mxu1 %v109_v48 }
 0x116   :  { %v243_v49 = vpop.f32.mrb[0].mxu0  ;;  %v323_v50 = vpop.f32.mrb[0].mxu1 }
 0x117   :  { %v245_v51 = vpop.f32.mrb[1].mxu0  ;;  %v325_v52 = vpop.f32.mrb[1].mxu1  ;;  %434 = vst [vmem:[%s986_s2] sm:$0xff] %v243_v49  ;;  %450 = vst [vmem:[%s986_s2 + $0x80] sm:$0xff] %v323_v50 }
 0x11a   :  { %v248_v53 = vpop.f32.mrb[2].mxu0  ;;  %v328_v54 = vpop.f32.mrb[2].mxu1 }
 0x11b   :  { %v250_v55 = vpop.f32.mrb[3].mxu0  ;;  %v330_v56 = vpop.f32.mrb[3].mxu1  ;;  %435 = vst [vmem:[%s986_s2 + $0x8] sm:$0xff] %v248_v53  ;;  %451 = vst [vmem:[%s986_s2 + $0x88] sm:$0xff] %v328_v54 }
 0x11e   :  { %v253_v57 = vpop.f32.mrb[4].mxu0  ;;  %v333_v58 = vpop.f32.mrb[4].mxu1 }
 0x11f   :  { %v255_v59 = vpop.f32.mrb[5].mxu0  ;;  %v335_v60 = vpop.f32.mrb[5].mxu1  ;;  %436 = vst [vmem:[%s986_s2 + $0x10] sm:$0xff] %v253_v57  ;;  %452 = vst [vmem:[%s986_s2 + $0x90] sm:$0xff] %v333_v58 }
 0x122   :  { %v258_v61 = vpop.f32.mrb[6].mxu0  ;;  %v338_v62 = vpop.f32.mrb[6].mxu1 }
 0x123   :  { %v260_v63 = vpop.f32.mrb[7].mxu0  ;;  %v340_v0 = vpop.f32.mrb[7].mxu1  ;;  %437 = vst [vmem:[%s986_s2 + $0x18] sm:$0xff] %v258_v61  ;;  %453 = vst [vmem:[%s986_s2 + $0x98] sm:$0xff] %v338_v62 }
 0x126   :  { %v263_v1 = vpop.f32.mrb[8].mxu0  ;;  %v343_v2 = vpop.f32.mrb[8].mxu1 }
 0x127   :  { %v265_v3 = vpop.f32.mrb[9].mxu0  ;;  %v345_v4 = vpop.f32.mrb[9].mxu1  ;;  %438 = vst [vmem:[%s986_s2 + $0x20] sm:$0xff] %v263_v1  ;;  %454 = vst [vmem:[%s986_s2 + $0xa0] sm:$0xff] %v343_v2 }
 0x12a   :  { %v268_v5 = vpop.f32.mrb[10].mxu0  ;;  %v348_v6 = vpop.f32.mrb[10].mxu1 }
 0x12b   :  { %v270_v7 = vpop.f32.mrb[11].mxu0  ;;  %v350_v8 = vpop.f32.mrb[11].mxu1  ;;  %439 = vst [vmem:[%s986_s2 + $0x28] sm:$0xff] %v268_v5  ;;  %455 = vst [vmem:[%s986_s2 + $0xa8] sm:$0xff] %v348_v6 }
 0x12e   :  { %v273_v9 = vpop.f32.mrb[12].mxu0  ;;  %v353_v10 = vpop.f32.mrb[12].mxu1 }
 0x12f   :  { %v275_v11 = vpop.f32.mrb[13].mxu0  ;;  %v355_v12 = vpop.f32.mrb[13].mxu1  ;;  %440 = vst [vmem:[%s986_s2 + $0x30] sm:$0xff] %v273_v9  ;;  %456 = vst [vmem:[%s986_s2 + $0xb0] sm:$0xff] %v353_v10 }
 0x132   :  { %v278_v13 = vpop.f32.mrb[14].mxu0  ;;  %v358_v14 = vpop.f32.mrb[14].mxu1 }
 0x133   :  { %v280_v15 = vpop.f32.mrb[15].mxu0  ;;  %v360_v16 = vpop.f32.mrb[15].mxu1  ;;  %441 = vst [vmem:[%s986_s2 + $0x38] sm:$0xff] %v278_v13  ;;  %457 = vst [vmem:[%s986_s2 + $0xb8] sm:$0xff] %v358_v14 }
 0x136   :  { %v283_v17 = vpop.f32.mrb[16].mxu0  ;;  %v363_v18 = vpop.f32.mrb[16].mxu1 }
 0x137   :  { %v285_v19 = vpop.f32.mrb[17].mxu0  ;;  %v365_v20 = vpop.f32.mrb[17].mxu1  ;;  %442 = vst [vmem:[%s986_s2 + $0x40] sm:$0xff] %v283_v17  ;;  %458 = vst [vmem:[%s986_s2 + $0xc0] sm:$0xff] %v363_v18 }
 0x13a   :  { %v288_v21 = vpop.f32.mrb[18].mxu0  ;;  %v368_v22 = vpop.f32.mrb[18].mxu1 }
 0x13b   :  { %v290_v23 = vpop.f32.mrb[19].mxu0  ;;  %v370_v24 = vpop.f32.mrb[19].mxu1  ;;  %443 = vst [vmem:[%s986_s2 + $0x48] sm:$0xff] %v288_v21  ;;  %459 = vst [vmem:[%s986_s2 + $0xc8] sm:$0xff] %v368_v22 }
 0x13e   :  { %v293_v25 = vpop.f32.mrb[20].mxu0  ;;  %v373_v26 = vpop.f32.mrb[20].mxu1 }
 0x13f   :  { %v295_v27 = vpop.f32.mrb[21].mxu0  ;;  %v375_v28 = vpop.f32.mrb[21].mxu1  ;;  %444 = vst [vmem:[%s986_s2 + $0x50] sm:$0xff] %v293_v25  ;;  %460 = vst [vmem:[%s986_s2 + $0xd0] sm:$0xff] %v373_v26 }
 0x142   :  { %v298_v29 = vpop.f32.mrb[22].mxu0  ;;  %v378_v30 = vpop.f32.mrb[22].mxu1 }
 0x143   :  { %v300_v31 = vpop.f32.mrb[23].mxu0  ;;  %v380_v32 = vpop.f32.mrb[23].mxu1  ;;  %445 = vst [vmem:[%s986_s2 + $0x58] sm:$0xff] %v298_v29  ;;  %461 = vst [vmem:[%s986_s2 + $0xd8] sm:$0xff] %v378_v30 }
 0x146   :  { %v303_v33 = vpop.f32.mrb[24].mxu0  ;;  %v383_v34 = vpop.f32.mrb[24].mxu1 }
 0x147   :  { %v305_v35 = vpop.f32.mrb[25].mxu0  ;;  %v385_v36 = vpop.f32.mrb[25].mxu1  ;;  %446 = vst [vmem:[%s986_s2 + $0x60] sm:$0xff] %v303_v33  ;;  %462 = vst [vmem:[%s986_s2 + $0xe0] sm:$0xff] %v383_v34 }
 0x14a   :  { %v308_v37 = vpop.f32.mrb[26].mxu0  ;;  %v388_v38 = vpop.f32.mrb[26].mxu1 }
 0x14b   :  { %v310_v39 = vpop.f32.mrb[27].mxu0  ;;  %v390_v40 = vpop.f32.mrb[27].mxu1  ;;  %447 = vst [vmem:[%s986_s2 + $0x68] sm:$0xff] %v308_v37  ;;  %463 = vst [vmem:[%s986_s2 + $0xe8] sm:$0xff] %v388_v38 }
 0x14e   :  { %v313_v41 = vpop.f32.mrb[28].mxu0  ;;  %v393_v42 = vpop.f32.mrb[28].mxu1 }
 0x14f   :  { %v315_v43 = vpop.f32.mrb[29].mxu0  ;;  %v395_v44 = vpop.f32.mrb[29].mxu1  ;;  %448 = vst [vmem:[%s986_s2 + $0x70] sm:$0xff] %v313_v41  ;;  %464 = vst [vmem:[%s986_s2 + $0xf0] sm:$0xff] %v393_v42 }
 0x152   :  { %v318_v45 = vpop.f32.mrb[30].mxu0  ;;  %v398_v46 = vpop.f32.mrb[30].mxu1 }
 0x153   :  { %v320_v47 = vpop.f32.mrb[31].mxu0  ;;  %v400_v48 = vpop.f32.mrb[31].mxu1  ;;  %449 = vst [vmem:[%s986_s2 + $0x78] sm:$0xff] %v318_v45  ;;  %465 = vst [vmem:[%s986_s2 + $0xf8] sm:$0xff] %v398_v46 }

</bundles_post_ra>
